<compile_context>
chip_gen: v7x
topology: tpu7x:2x2x1
jax: 0.10.0
libtpu: 0.0.40
codegen_flags: <defaults>
</compile_context>

<pallas_src>
import functools
import math

import jax
import jax.numpy as jnp
from jax.experimental import pallas as pl
from jax.experimental.pallas import tpu as pltpu


def calculate_laplacian_with_self_loop(adj: jnp.ndarray) -> jnp.ndarray:
    """Symmetric normalized laplacian with self loops: D^-1/2 (A + I) D^-1/2."""
    a = adj + jnp.eye(adj.shape[0], dtype=adj.dtype)
    deg = a.sum(axis=1)
    d_inv_sqrt = jnp.where(deg > 0, 1.0 / jnp.sqrt(deg), 0.0)
    return a * d_inv_sqrt[:, None] * d_inv_sqrt[None, :]


def _round_up(x: int, m: int) -> int:
    return ((x + m - 1) // m) * m


def _largest_divisor_tile(n: int, target: int, unit: int) -> int:
    """Largest multiple of `unit` that divides n and is <= target (>= unit)."""
    t = (min(target, n) // unit) * unit
    while t >= unit:
        if n % t == 0:
            return t
        t -= unit
    return unit  # `unit` always divides n by construction (n is a multiple of 128)


def gcn_kernel(l_ref, xw_ref, o_ref, acc_ref, *, xw_resident: bool, tk: int):
    """One (row-tile i, contraction-tile k) step of out = tanh(L @ XW).

    l_ref   : (tm, tk)              bf16  Laplacian tile
    xw_ref  : (N_pad, F_pad) or (tk, F_pad)  bf16  batch-folded X @ W
    o_ref   : (tm, F_pad)           bf16  lane-dense folded output tile
    acc_ref : (tm, F_pad)           f32   VMEM accumulator
    """
    k = pl.program_id(1)

    @pl.when(k == 0)
    def _init():
        acc_ref[...] = jnp.zeros_like(acc_ref)

    if xw_resident:
        # XW lives fully in VMEM; take the k-window with an aligned dynamic slice.
        start = pl.multiple_of(k * tk, tk)
        xw = xw_ref[pl.ds(start, tk), :]
    else:
        xw = xw_ref[...]

    acc_ref[...] += jnp.dot(l_ref[...], xw, preferred_element_type=jnp.float32)

    @pl.when(k == pl.num_programs(1) - 1)
    def _finalize():
        o_ref[...] = jnp.tanh(acc_ref[...]).astype(o_ref.dtype)


def gcn_layer_forward(inputs: jnp.ndarray, laplacian: jnp.ndarray,
                      w: jnp.ndarray, *, tile_m: int = 1024,
                      tile_k: int = 1024) -> jnp.ndarray:
    """inputs: (batch, num_nodes, input_dim) -> (batch, num_nodes, output_dim)."""
    batch, num_nodes, _ = inputs.shape
    output_dim = w.shape[1]

    # ---- Reassociation: XW = X @ W computed once in f32, batch folded into lanes.
    xw = jnp.einsum('bnd,de->bne',
                    inputs.astype(jnp.float32), w.astype(jnp.float32))
    feat = batch * output_dim
    feat_pad = _round_up(feat, 128)
    xw_fold = jnp.transpose(xw, (1, 0, 2)).reshape(num_nodes, feat)

    # ---- Generation-aware VMEM budget.
    try:
        vmem_cap = int(pltpu.get_tpu_info().vmem_capacity_bytes)
    except Exception:
        vmem_cap = 64 << 20  # conservative (v7x per-TC)
    budget = min(int(0.6 * vmem_cap), 100 << 20)

    # ---- Node-axis padding + tiles (tiles always divide the padded extent).
    n_pad = _round_up(num_nodes, 128)
    tk = _largest_divisor_tile(n_pad, tile_k, 128)
    # Row-tile: bf16 sublane unit is 16; keep >= 2 row tiles so the parallel
    # grid axis spans both v7x TensorCores; fit acc/out/L tiles in half budget.
    per_row_bytes = 4 * feat_pad + 2 * 2 * feat_pad + 2 * 2 * tk
    max_tm_budget = max(16, (budget // 2) // per_row_bytes)
    tm_bound = n_pad // 2 if n_pad >= 32 else n_pad
    tm = _largest_divisor_tile(n_pad, min(tile_m, tm_bound, max_tm_budget), 16)
    grid = (n_pad // tm, n_pad // tk)

    # ---- bf16 operands, zero padded (zero rows/cols are harmless).
    l_bf = jnp.pad(laplacian.astype(jnp.bfloat16),
                   ((0, n_pad - num_nodes), (0, n_pad - num_nodes)))
    xw_bf = jnp.pad(xw_fold.astype(jnp.bfloat16),
                    ((0, n_pad - num_nodes), (0, feat_pad - feat)))

    # Keep XW fully VMEM-resident if it comfortably fits the budget.
    xw_full_bytes = 2 * n_pad * feat_pad * 2      # allow for double buffering
    xw_resident = xw_full_bytes <= budget // 4
    xw_spec = (pl.BlockSpec((n_pad, feat_pad), lambda i, k: (0, 0))
               if xw_resident
               else pl.BlockSpec((tk, feat_pad), lambda i, k: (k, 0)))

    # Working set: double-buffered L + XW + output, single f32 accumulator.
    ws = (2 * tm * tk * 2
          + (xw_full_bytes if xw_resident else 2 * tk * feat_pad * 2)
          + 2 * tm * feat_pad * 2
          + tm * feat_pad * 4)
    vmem_limit = int(min(max(int(1.5 * ws), 16 << 20), budget))

    out_fold = pl.pallas_call(
        functools.partial(gcn_kernel, xw_resident=xw_resident, tk=tk),
        out_shape=jax.ShapeDtypeStruct((n_pad, feat_pad), jnp.bfloat16),
        grid_spec=pltpu.PrefetchScalarGridSpec(
            num_scalar_prefetch=0,
            grid=grid,
            in_specs=[
                pl.BlockSpec((tm, tk), lambda i, k: (i, k)),
                xw_spec,
            ],
            out_specs=pl.BlockSpec((tm, feat_pad), lambda i, k: (i, 0)),
            scratch_shapes=[pltpu.VMEM((tm, feat_pad), jnp.float32)],
        ),
        compiler_params=pltpu.CompilerParams(
            dimension_semantics=("parallel", "arbitrary"),
            vmem_limit_bytes=vmem_limit,
        ),
    )(l_bf, xw_bf)

    # Drop node / lane padding, unfold the batch axis, return f32 like the module.
    out = out_fold[:num_nodes, :feat].reshape(num_nodes, batch, output_dim)
    return jnp.transpose(out, (1, 0, 2)).astype(jnp.float32)


def reference_forward(inputs, laplacian, w):
    """Pure-JAX f32 reference mirroring the PyTorch forward exactly."""
    batch, num_nodes, input_dim = inputs.shape
    x = jnp.transpose(inputs, (1, 0, 2)).reshape(num_nodes, batch * input_dim)
    ax = laplacian @ x
    ax = ax.reshape(num_nodes * batch, input_dim)
    out = jnp.tanh(ax @ w)
    out = out.reshape(num_nodes, batch, w.shape[1])
    return jnp.transpose(out, (1, 0, 2))


if __name__ == "__main__":
    key = jax.random.PRNGKey(0)
    k_adj, k_x, k_w = jax.random.split(key, 3)

    batch = 2
    num_nodes = 16
    input_dim = 8
    output_dim = 32

    # Deterministic synthetic symmetric adjacency (binary, no self loops).
    a = (jax.random.uniform(k_adj, (num_nodes, num_nodes)) > 0.7).astype(jnp.float32)
    adj = jnp.maximum(a, a.T) * (1.0 - jnp.eye(num_nodes, dtype=jnp.float32))

    laplacian = calculate_laplacian_with_self_loop(adj)

    # Xavier-uniform init for W with gain = calculate_gain('tanh') = 5/3.
    gain = 5.0 / 3.0
    limit = gain * math.sqrt(6.0 / (input_dim + output_dim))
    w = jax.random.uniform(k_w, (input_dim, output_dim),
                           minval=-limit, maxval=limit, dtype=jnp.float32)

    inputs = jax.random.normal(k_x, (batch, num_nodes, input_dim),
                               dtype=jnp.float32)

    out = gcn_layer_forward(inputs, laplacian, w)
    jax.block_until_ready(out)

    ref = reference_forward(inputs, laplacian, w)
    assert out.shape == (batch, num_nodes, output_dim)
    # bf16 operands + bf16 output in the kernel -> loosened tolerance vs f32 ref.
    assert jnp.allclose(out, ref, atol=3e-2, rtol=3e-2)

    print("KERNEL_OK")
</pallas_src>

<mosaic_0001>
module attributes {stable_mosaic.version = 11 : i64} {
  func.func @gcn_kernel(%arg0: i32, %arg1: i32, %arg2: memref<64x128xbf16, #tpu.memory_space<vmem>>, %arg3: memref<128x128xbf16, #tpu.memory_space<vmem>>, %arg4: memref<64x128xbf16, #tpu.memory_space<vmem>>, %arg5: memref<64x128xf32, #tpu.memory_space<vmem>>) attributes {dimension_semantics = [#tpu.dimension_semantics<parallel>, #tpu.dimension_semantics<arbitrary>], iteration_bounds = array<i64: 2, 1>, scalar_prefetch = 0 : i64, scratch_operands = 1 : i64, tpu.core_type = #tpu.core_type<tc>, window_params = [{transform_indices = @transform_0, window_bounds = array<i64: 64, 128>}, {pipeline_mode = #tpu.pipeline_mode<synchronous>, transform_indices = @transform_1, window_bounds = array<i64: 128, 128>}, {transform_indices = @transform_2, window_bounds = array<i64: 64, 128>}]} {
    %c0_i32 = arith.constant 0 : i32
    %0 = arith.cmpi eq, %arg1, %c0_i32 : i32
    %1 = arith.extui %0 : i1 to i32
    %c0_i32_0 = arith.constant 0 : i32
    %2 = arith.cmpi ne, %1, %c0_i32_0 : i32
    scf.if %2 {
      %cst_9 = arith.constant 0.000000e+00 : f32
      %15 = vector.broadcast %cst_9 : f32 to vector<64x128xf32>
      %c0_10 = arith.constant 0 : index
      %c0_11 = arith.constant 0 : index
      %16 = vector.load %arg5[%c0_10, %c0_11] : memref<64x128xf32, #tpu.memory_space<vmem>>, vector<64x128xf32>
      tpu.vector_store %arg5[%c0_10, %c0_11], %15 {strides = array<i32>} : memref<64x128xf32, #tpu.memory_space<vmem>>, vector<64x128xf32>,
    } else {
    }
    %c128_i32 = arith.constant 128 : i32
    %3 = arith.muli %arg1, %c128_i32 : i32
    %4 = tpu.assume_multiple %3, 128 : i32
    %5 = arith.index_cast %4 : i32 to index
    %c0 = arith.constant 0 : index
    %6 = vector.load %arg3[%5, %c0] : memref<128x128xbf16, #tpu.memory_space<vmem>>, vector<128x128xbf16>
    %c0_1 = arith.constant 0 : index
    %c0_2 = arith.constant 0 : index
    %7 = vector.load %arg5[%c0_1, %c0_2] : memref<64x128xf32, #tpu.memory_space<vmem>>, vector<64x128xf32>
    %c0_3 = arith.constant 0 : index
    %c0_4 = arith.constant 0 : index
    %8 = vector.load %arg2[%c0_3, %c0_4] : memref<64x128xbf16, #tpu.memory_space<vmem>>, vector<64x128xbf16>
    %cst = arith.constant dense<0.000000e+00> : vector<64x128xf32>
    %9 = tpu.matmul %8, %6, %cst {dimension_numbers = #tpu.dot_dimension_numbers<[1], [0], [0], [1], [0, 0, 1, 1], [], []>} : vector<64x128xbf16>, vector<128x128xbf16>, vector<64x128xf32> -> vector<64x128xf32>
    %10 = arith.addf %7, %9 : vector<64x128xf32>
    %c0_5 = arith.constant 0 : index
    %c0_6 = arith.constant 0 : index
    %11 = vector.load %arg5[%c0_5, %c0_6] : memref<64x128xf32, #tpu.memory_space<vmem>>, vector<64x128xf32>
    tpu.vector_store %arg5[%c0_5, %c0_6], %10 {strides = array<i32>} : memref<64x128xf32, #tpu.memory_space<vmem>>, vector<64x128xf32>,
    %c0_i32_7 = arith.constant 0 : i32
    %12 = arith.cmpi eq, %arg1, %c0_i32_7 : i32
    %13 = arith.extui %12 : i1 to i32
    %c0_i32_8 = arith.constant 0 : i32
    %14 = arith.cmpi ne, %13, %c0_i32_8 : i32
    scf.if %14 {
      %c0_9 = arith.constant 0 : index
      %c0_10 = arith.constant 0 : index
      %15 = vector.load %arg5[%c0_9, %c0_10] : memref<64x128xf32, #tpu.memory_space<vmem>>, vector<64x128xf32>
      %16 = math.tanh %15 : vector<64x128xf32>
      %17 = arith.truncf %16 : vector<64x128xf32> to vector<64x128xbf16>
      %c0_11 = arith.constant 0 : index
      %c0_12 = arith.constant 0 : index
      %18 = vector.load %arg4[%c0_11, %c0_12] : memref<64x128xbf16, #tpu.memory_space<vmem>>, vector<64x128xbf16>
      tpu.vector_store %arg4[%c0_11, %c0_12], %17 {strides = array<i32>} : memref<64x128xbf16, #tpu.memory_space<vmem>>, vector<64x128xbf16>,
    } else {
    }
    return
  }
  func.func @transform_0(%arg0: i32, %arg1: i32) -> (i32, i32) {
    %c0_i32 = arith.constant 0 : i32
    return %arg0, %arg1 : i32, i32
  }
  func.func @transform_1(%arg0: i32, %arg1: i32) -> (i32, i32) {
    %c0_i32 = arith.constant 0 : i32
    %c0_i32_0 = arith.constant 0 : i32
    %c0_i32_1 = arith.constant 0 : i32
    return %c0_i32, %c0_i32_0 : i32, i32
  }
  func.func @transform_2(%arg0: i32, %arg1: i32) -> (i32, i32) {
    %c0_i32 = arith.constant 0 : i32
    %c0_i32_0 = arith.constant 0 : i32
    return %arg0, %c0_i32 : i32, i32
  }
}

</mosaic_0001>

<bundles_post_ra>
// kernel: tpu_custom_call.1
= control target key start
LH: loop header
LB: loop body
LE: loop exit
PB: predicated region body
PF: predicated region fallthrough
CT: control target
= control target key end

     0   :  { %7 = vsyncpa [#allocation4], 0  ;;  %s1195_s0 = inlined_call_operand.hbm [shape: bf16[128,128], index: 0, kind: input, shape index: {}]   ;;  %s1196_s1 = inlined_call_operand.hbm [shape: bf16[128,128], index: 1, kind: input, shape index: {}]   ;;  %s1197_s2 = inlined_call_operand.hbm [shape: bf16[128,128], index: 2, kind: output, shape index: {}]  }
   0x1   :  { %9 = vsyncpa [#allocation4 + $0x1], 0 }
   0x2   :  { %10 = vsyncpa [#allocation7], 0 }
   0x3   :  { %11 = vsyncpa [#allocation5], 0 }
   0x4   :  { %13 = vsyncpa [#allocation5 + $0x1], 0  ;;  %s960_s9 = smov 0   ;;  %s962_s10 = smov 0  }
   0x5   :  { %s964_s11 = smov 0   ;;  %s966_s12 = smov 0  }
   0x6   :  { %s968_s13 = smov 0   ;;  %s970_s14 = smov 0  }
   0x7 LB: > { %s565_s15 = sadd.s32 4294967295, %s936_s14   ;;  %s566_s16 = sadd.s32 4294967294, %s936_s14   ;;  %s936_s14 = sphi %s970_s14, %s19_s14   ;;  %s932_s13 = sphi %s968_s13, %s1221_s13   ;;  %s928_s12 = sphi %s966_s12, %s1220_s12   ;;  %s924_s11 = sphi %s964_s11, %s1219_s11   ;;  %s920_s10 = sphi %s962_s10, %s1218_s10   ;;  %s916_s9 = sphi %s960_s9, %s1217_s9  }
   0x8   : > { %p53_p0 = scmp.ne.s32.totalorder %s920_s10, %s916_s9  ;;  %p994_p1 = scmp.eq.s32.totalorder %s565_s15, 0 }
   0x9   : > { %p998_p2 = scmp.eq.s32.totalorder %s565_s15, 1  ;;  %p104_p3 = scmp.eq.s32.totalorder %s566_s16, 1 }
   0xa   : > { %s1202_s17 = scalar_select %p994_p1, 1, 0 }
   0xb   : > { %s1203_s18 = scalar_select %p998_p2, 1, 0 }
   0xc   : > { %p1004_p4 = por %p994_p1, %p53_p0  ;;  %p567_p5 = scmp.ge.s32.totalorder %s936_s14, 1 }
   0xd   : > { %p1009_p6 = por %p104_p3, %p53_p0  ;;  %p111_p7 = scmp.lt.s32.totalorder %s936_s14, 3 }
   0xe   : > { %s1204_s19 = scalar_select %p1004_p4, 1, 0 }
   0xf   : > { %s1205_s20 = scalar_select %p1009_p6, 1, 0 }
  0x10   : > { %p1014_p8 = pnand %p567_p5, %p111_p7  ;;  %s938_s22 = smov [#allocation6]  }
  0x11   : > { %s123_s23 = sshll.u32 %s938_s22, 4  ;;  %s31_s25 = sadd.s32 1, %s932_s13  ;;  %s124_s23 = int_to_ptr.vmem [resolvable:$true] %s123_s23 }
  0x12   : > { %s1206_s21 = scalar_select %p1014_p8, 1, 0 }
  0x13   : > { %p695_p9 = pneg %p1014_p8  ;;  %s792_s28 = scalar_lea.hbm %s1196_s1, 1024 }
  0x14   : > { %p793_p12 = scmp.ne.s32.totalorder %s1196_s1, %s792_s28  ;;  %p799_p5 = scmp.lt.u32.totalorder %s792_s28, %s1196_s1 }
  0x15   : > { %p1023_p11 = pnand %p695_p9, %p994_p1 }
  0x17   : > { %p794_p13 = pneg %p1023_p11 }
  0x19   : > { %p795_p0 = pnand %p794_p13, %p793_p12 }
  0x1b   : > { %p796_p3 = pneg %p795_p0 }
  0x1d   : > { %p801_p7 = pnand %p799_p5, %p796_p3 }
  0x1f   : > { %804 = shalt.err (!%p801_p7)
}
  0x20   : > { %s805_s5 = scalar_lea.vmem %s124_s23, 1024  ;;  %p813_p1 = scmp.lt.s32.totalorder %s124_s23, %s124_s23 }
  0x21   : > { %p806_p9 = scmp.ne.s32.totalorder %s124_s23, %s805_s5  ;;  %p814_p4 = scmp.lt.s32.totalorder %s805_s5, %s805_s5 }
  0x23   : > { %p808_p10 = pnand %p806_p9, %p794_p13  ;;  %p815_p8 = por %p814_p4, %p813_p1 }
  0x25   : > { %p809_p6 = pneg %p808_p10 }
  0x27   : > { %p816_p2 = pnand %p815_p8, %p809_p6 }
  0x29   : > { %819 = shalt.err (!%p816_p2)
}
  0x2a   : > { %s939_s6 = smov 64   ;;  %s940_s7 = smov 4  }
  0x2b   : > { %698 = dma.hbm_to_vmem [thread:$0]  (!%p1023_p11), %s1196_s1, 1024, %s124_s23, [#allocation7], %s939_s6, %s939_s6, %s940_s7  }
  0x2c   : > { %p33_p1 = scmp.ge.s32.totalorder %s31_s25, 2  ;;  %s40_s16 = sadd.s32 1, %s924_s11 }
  0x2d   : > { %p47_p2 = scmp.ne.s32.totalorder %s924_s11, %s920_s10  ;;  %p48_p4 = scmp.eq.s32.totalorder %s936_s14, 0 }
  0x2e   : > { %s1223_s25 = smov (%p33_p1, %s31_s25), 0  ;;  %p1209_p8 = scmp.ne.s32.totalorder %s1203_s18, 0 }
  0x2f   : > { %p1053_p6 = por %p48_p4, %p47_p2  ;;  %s35_s26 = ssub.s32 %s932_s13, %s1223_s25 }
  0x30   : > { %p1059_p10 = por %p1209_p8, %p47_p2  ;;  %p708_p12 = scmp.lt.s32.totalorder %s936_s14, 2 }
  0x31   : > { %p38_p11 = scmp.eq.s32.totalorder %s35_s26, 0  ;;  %s137_s23 = sand.u32 1, %s924_s11  }
  0x32   : > { %s570_s27 = sshll.u32 %s137_s23, 5  ;;  %s602_s29 = sshll.u32 %s932_s13, 9 }
  0x33   : > { %s1068_s28 = scalar_select %p38_p11, %s924_s11, %s40_s16  }
  0x34   : > { %s1074_s4 = scalar_lea.hbm %s1195_s0, %s602_s29  ;;  %s141_s18 = scalar_lea.vmem [#allocation3], %s570_s27 }
  0x35   : > { %s149_s5 = sshll.u32 %s141_s18, 4  ;;  %p1080_p13 = pnand %p708_p12, %p1053_p6  ;;  %s1076_s5 = int_to_ptr.vmem [resolvable:$true] %s149_s5 }
  0x36   : > { %s1084_s15 = scalar_lea.sflag [#allocation4], %s137_s23  ;;  %s820_s16 = scalar_lea.hbm %s1074_s4, 512 }
  0x37   : > { %p821_p0 = scmp.ne.s32.totalorder %s1074_s4, %s820_s16  ;;  %p822_p3 = pneg %p1080_p13 }
  0x38   : > { %s825_s22 = scalar_lea.hbm %s1195_s0, 1024  ;;  %p826_p9 = scmp.lt.u32.totalorder %s1074_s4, %s1195_s0 }
  0x39   : > { %p823_p5 = pnand %p822_p3, %p821_p0  ;;  %p827_p1 = scmp.lt.u32.totalorder %s825_s22, %s820_s16 }
  0x3a   : > { %p829_p4 = scmp.lt.u32.totalorder %s820_s16, %s1074_s4 }
  0x3b   : > { %p824_p7 = pneg %p823_p5  ;;  %p828_p2 = por %p827_p1, %p826_p9 }
  0x3d   : > { %p830_p6 = por %p829_p4, %p828_p2 }
  0x3f   : > { %p831_p8 = pnand %p830_p6, %p824_p7 }
  0x41   : > { %834 = shalt.err (!%p831_p8)
}
  0x42   : > { %s835_s23 = scalar_lea.vmem %s1076_s5, 512  ;;  %s941_s3 = smov [#allocation3]  }
  0x43   : > { %p836_p12 = scmp.ne.s32.totalorder %s1076_s5, %s835_s23  ;;  %s840_s18 = sshll.u32 %s941_s3, 4  ;;  %s841_s18 = int_to_ptr.vmem [resolvable:$false] %s840_s18 }
  0x44   : > { %s842_s26 = scalar_lea.vmem %s841_s18, 1024  ;;  %p843_p5 = scmp.lt.s32.totalorder %s1076_s5, %s841_s18 }
  0x45   : > { %p838_p11 = pnand %p836_p12, %p822_p3  ;;  %p844_p9 = scmp.lt.s32.totalorder %s842_s26, %s835_s23 }
  0x47   : > { %p839_p0 = pneg %p838_p11  ;;  %p845_p1 = por %p844_p9, %p843_p5 }
  0x49   : > { %p846_p2 = pnand %p845_p1, %p839_p0 }
  0x4b   : > { %849 = shalt.err (!%p846_p2)
}
  0x4c   : > { %702 = dma.hbm_to_vmem [thread:$0]  (!%p1080_p13), %s1074_s4, 512, %s1076_s5, %s1084_s15, %s939_s6, %s939_s6, %s940_s7  }
  0x4d   : > { %p1212_p3 = scmp.ne.s32.totalorder %s1206_s21, 0 }
  0x4e   : > { %s1118_s16 = sand.u32 (!%p1212_p3), 1, %s920_s10   ;;  %p1213_p7 = scmp.ne.s32.totalorder (!%p1212_p3), %s1204_s19, 0 }
  0x4f   : > { %161 = sbr.rel (%p1212_p3) target bundleno = 370 (0x172), region = 28  ;;  %s574_s27 = sshll.u32 (!%p1212_p3), %s1118_s16, 5 }
  0x50   : > { %s164_s22 = scalar_lea.sflag (!%p1212_p3), [#allocation4], %s1118_s16  ;;  %s1124_s8 = scalar_lea.vmem (!%p1212_p3), [#allocation3], %s574_s27 }
  0x56   : > { %903 = dma.done.wait (%p1213_p7), %s164_s22, 512  }
  0x57   : > { %905 = vsyncadd (%p1213_p7), %s164_s22, 4294966784  ;;  %p1214_p13 = scmp.ne.s32.totalorder %s1202_s17, 0 }
  0x59   : > { %907 = dma.done.wait (%p1214_p13), [#allocation7], 1024  }
  0x5a   : > { %909 = vsyncadd (%p1214_p13), [#allocation7], 4294966272  ;;  %v764_v0 = vld [vmem:[#allocation6] sm:$0xff]   ;;  %v765_v1 = vld [vmem:[#allocation6 + $0x8] sm:$0xff]   ;;  %s611_s17 = sshll.u32 %s928_s12, 9  ;;  %s191_s19 = scalar_lea.vmem [#allocation8], %s574_s27 }
  0x5b   : > { %647 = vmatprep.subr.bf16.mxu0 %v764_v0  ;;  %671 = vmatprep.subr.bf16.mxu1 %v764_v0  ;;  %v766_v2 = vld [vmem:[#allocation6 + $0x10] sm:$0xff]   ;;  %v767_v3 = vld [vmem:[#allocation6 + $0x18] sm:$0xff]   ;;  %v772_v4 = vld [vmem:[%s1124_s8] sm:$0xff]   ;;  %s470_s21 = sshll.u32 %s191_s19, 4  ;;  %s1144_s4 = scalar_lea.hbm %s1197_s2, %s611_s17  ;;  %s1146_s21 = int_to_ptr.vmem [resolvable:$true] %s470_s21 }
  0x5c   : > { %648 = vmatpush3.bf16.msra.mxu0 %v764_v0  ;;  %679 = vmatpush3.bf16.msra.mxu1 %v764_v0  ;;  %v773_v5 = vld [vmem:[%s1124_s8 + $0x10] sm:$0xff]   ;;  %v768_v6 = vld [vmem:[#allocation6 + $0x20] sm:$0xff]   ;;  %v769_v7 = vld [vmem:[#allocation6 + $0x28] sm:$0xff]   ;;  %s457_s12 = scalar_lea.sflag [#allocation5], %s1118_s16  ;;  %s850_s5 = scalar_lea.vmem %s1146_s21, 512 }
  0x5d   : > { %649 = vmatprep.subr.bf16.mxu0 %v765_v1  ;;  %672 = vmatprep.subr.bf16.mxu1 %v765_v1  ;;  %v770_v8 = vld [vmem:[#allocation6 + $0x30] sm:$0xff]   ;;  %v771_v9 = vld [vmem:[#allocation6 + $0x38] sm:$0xff]   ;;  %v774_v10 = vld [vmem:[%s1124_s8 + $0x8] sm:$0xff]   ;;  %p851_p4 = scmp.ne.s32.totalorder %s1146_s21, %s850_s5  ;;  %s942_s15 = smov [#allocation8]  }
  0x5e   : > { %663 = vmatprep.mubr.bf16.mxu0 %v772_v4  ;;  %667 = vmatprep.mubr.bf16.mxu1 %v773_v5  ;;  %v775_v11 = vld [vmem:[%s1124_s8 + $0x18] sm:$0xff]   ;;  %s854_s29 = sshll.u32 %s942_s15, 4  ;;  %s855_s29 = int_to_ptr.vmem [resolvable:$false] %s854_s29 }
  0x5f   : > { %p852_p6 = pnand %p851_p4, %p1059_p10  ;;  %s856_s30 = scalar_lea.vmem %s855_s29, 1024 }
  0x60   : > { %650 = vmatpush3.bf16.msra.mxu0 %v765_v1  ;;  %680 = vmatpush3.bf16.msra.mxu1 %v765_v1  ;;  %p857_p12 = scmp.lt.s32.totalorder %s1146_s21, %s855_s29  ;;  %p858_p11 = scmp.lt.s32.totalorder %s856_s30, %s850_s5 }
  0x61   : > { %651 = vmatprep.subr.bf16.mxu0 %v766_v2  ;;  %673 = vmatprep.subr.bf16.mxu1 %v766_v2  ;;  %p853_p8 = pneg %p852_p6 }
  0x62   : > { %p859_p0 = por %p858_p11, %p857_p12 }
  0x64   : > { %652 = vmatpush3.bf16.msra.mxu0 %v766_v2  ;;  %681 = vmatpush3.bf16.msra.mxu1 %v766_v2  ;;  %p860_p5 = pnand %p859_p0, %p853_p8 }
  0x65   : > { %653 = vmatprep.subr.bf16.mxu0 %v767_v3  ;;  %674 = vmatprep.subr.bf16.mxu1 %v767_v3 }
  0x68   : > { %654 = vmatpush3.bf16.msra.mxu0 %v767_v3  ;;  %682 = vmatpush3.bf16.msra.mxu1 %v767_v3 }
  0x69   : > { %655 = vmatprep.subr.bf16.mxu0 %v768_v6  ;;  %675 = vmatprep.subr.bf16.mxu1 %v768_v6 }
  0x6c   : > { %656 = vmatpush3.bf16.msra.mxu0 %v768_v6  ;;  %683 = vmatpush3.bf16.msra.mxu1 %v768_v6 }
  0x6d   : > { %657 = vmatprep.subr.bf16.mxu0 %v769_v7  ;;  %676 = vmatprep.subr.bf16.mxu1 %v769_v7 }
  0x70   : > { %658 = vmatpush3.bf16.msra.mxu0 %v769_v7  ;;  %684 = vmatpush3.bf16.msra.mxu1 %v769_v7 }
  0x71   : > { %659 = vmatprep.subr.bf16.mxu0 %v770_v8  ;;  %677 = vmatprep.subr.bf16.mxu1 %v770_v8 }
  0x74   : > { %660 = vmatpush3.bf16.msra.mxu0 %v770_v8  ;;  %685 = vmatpush3.bf16.msra.mxu1 %v770_v8 }
  0x75   : > { %661 = vmatprep.subr.bf16.mxu0 %v771_v9  ;;  %678 = vmatprep.subr.bf16.mxu1 %v771_v9 }
  0x78   : > { %662 = vmatpush3.bf16.msra.mxu0 %v771_v9  ;;  %686 = vmatpush3.bf16.msra.mxu1 %v771_v9 }
  0x7b   : > { %664 = vmatmul.mubr.bf16.vlgmr.msra.gmra.mrb[0].mxu0 %v774_v10  ;;  %668 = vmatmul.mubr.bf16.vlgmr.msra.gmra.mrb[0].mxu1 %v775_v11 }
 0x14e   : > { %v665_v12 = vpop.f32.mrb[0].mxu0  ;;  %v669_v13 = vpop.f32.mrb[0].mxu1 }
 0x14f   : > { %776 = vtanh.f32 %v665_v12  ;;  %v350_v14 = vpop.f32.mrb[1].mxu0  ;;  %v366_v15 = vpop.f32.mrb[1].mxu1 }
 0x150   : > { %778 = vtanh.f32 %v669_v13  ;;  %v666_v16 = vpop.f32.mrb[2].mxu0  ;;  %v670_v17 = vpop.f32.mrb[2].mxu1 }
 0x151   : > { %780 = vtanh.f32 %v350_v14  ;;  %v353_v18 = vpop.f32.mrb[3].mxu0  ;;  %v369_v19 = vpop.f32.mrb[3].mxu1 }
 0x152   : > { %782 = vtanh.f32 %v366_v15 }
 0x153   : > { %784 = vtanh.f32 %v666_v16 }
 0x154   : > { %786 = vtanh.f32 %v670_v17 }
 0x155   : > { %788 = vtanh.f32 %v353_v18 }
 0x156   : > { %790 = vtanh.f32 %v369_v19 }
 0x159   : > { %v777_v20 = vpop.eup %776 }
 0x15a   : > { %v779_v21 = vpop.eup %778 }
 0x15b   : > { %v781_v22 = vpop.eup %780 }
 0x15c   : > { %v783_v23 = vpop.eup %782 }
 0x15d   : > { %v785_v24 = vpop.eup %784 }
 0x15e   : > { %v787_v25 = vpop.eup %786  ;;  %v620_v26 = vpack.c.bf16 %v785_v24, %v777_v20 }
 0x15f   : > { %v789_v27 = vpop.eup %788  ;;  %v630_v28 = vpack.c.bf16 %v787_v25, %v779_v21 }
 0x160   : > { %v791_v29 = vpop.eup %790  ;;  %632 = vst [vmem:[%s191_s19 + $0x8] sm:$0xff] %v620_v26   ;;  %v615_v30 = vpack.c.bf16 %v789_v27, %v781_v22 }
 0x161   : > { %634 = vst [vmem:[%s191_s19 + $0x18] sm:$0xff] %v630_v28   ;;  %v625_v31 = vpack.c.bf16 %v791_v29, %v783_v23 }
 0x162   : > { %616 = vst [vmem:[%s191_s19] sm:$0xff] %v615_v30  }
 0x163   : > { %633 = vst [vmem:[%s191_s19 + $0x10] sm:$0xff] %v625_v31  }
 0x164   : > { %863 = shalt.err (!%p860_p5)
}
 0x165   : > { %s864_s23 = scalar_lea.hbm %s1144_s4, 512  ;;  %s868_s26 = scalar_lea.hbm %s1197_s2, 1024 }
 0x166   : > { %p865_p9 = scmp.ne.s32.totalorder %s1144_s4, %s864_s23  ;;  %p869_p3 = scmp.lt.u32.totalorder %s1144_s4, %s1197_s2 }
 0x167   : > { %p870_p7 = scmp.lt.u32.totalorder %s868_s26, %s864_s23  ;;  %p872_p4 = scmp.lt.u32.totalorder %s864_s23, %s1144_s4 }
 0x168   : > { %p866_p1 = pnand %p865_p9, %p1059_p10 }
 0x169   : > { %p871_p13 = por %p870_p7, %p869_p3 }
 0x16a   : > { %p867_p2 = pneg %p866_p1 }
 0x16b   : > { %p873_p6 = por %p872_p4, %p871_p13 }
 0x16d   : > { %p874_p8 = pnand %p873_p6, %p867_p2 }
 0x16f   : > { %877 = shalt.err (!%p874_p8)
}
 0x170   : > { %s943_s8 = smov 64   ;;  %s944_s17 = smov 4  }
 0x171   : > { %693 = dma.vmem_to_hbm [thread:$0]  (%p1059_p10), %s1146_s21, 512, %s1144_s4, %s457_s12, %s943_s8, %s943_s8, %s944_s17  }
 0x172 PF: > { %s485_s19 = sand.u32 1, %s916_s9   ;;  %p1215_p12 = scmp.ne.s32.totalorder %s1205_s20, 0 }
 0x173   : > { %p1216_p11 = scmp.ge.s32.totalorder %s936_s14, 2  ;;  %s486_s6 = scalar_lea.sflag [#allocation5], %s485_s19 }
 0x175   : > { %p704_p0 = pnand %p1216_p11, %p1215_p12 }
 0x177   : > { %911 = dma.done.wait (!%p704_p0), %s486_s6, 512  }
 0x178   : > { %913 = vsyncadd (!%p704_p0), %s486_s6, 4294966784  ;;  %s19_s14 = sadd.s32 1, %s936_s14   ;;  %s1217_s9 = smov %s920_s10 }
 0x179   : > { %p16_p5 = scmp.ge.s32.totalorder %s19_s14, 4   ;;  %s1218_s10 = smov %s924_s11 }
 0x17a   : > { %s1219_s11 = smov %s1068_s28  ;;  %s1220_s12 = smov %s932_s13 }
 0x17b   : > { %s1221_s13 = smov %s1223_s25  ;;  %18 = sbr.rel (!%p16_p5) target bundleno = 7 (0x7), region = 86 }
 0x182   :  { %491 = vsyncpa [#allocation4], 1 }
 0x183   :  { %493 = vsyncpa [#allocation4 + $0x1], 1 }
 0x184   :  { %494 = vsyncpa [#allocation7], 1 }
 0x185   :  { %495 = vsyncpa [#allocation5], 1 }
 0x186   :  { %497 = vsyncpa [#allocation5 + $0x1], 1 }

</bundles_post_ra>
